<compile_context>
chip_gen: v7x
topology: tpu7x:2x2x1
jax: 0.10.0
libtpu: 0.0.40
codegen_flags: <defaults>
</compile_context>

<pallas_src>
import math

import jax
import jax.numpy as jnp
from jax.experimental import pallas as pl
from jax.experimental.pallas import tpu as pltpu


def _ceil_div(a, b):
    return -(-a // b)


def _convt_matmul_kernel(w_ref, b_ref, p_ref, o_ref):
    # w_ref: (RMp, CKp)  unified sub-pixel weight  (s*s*Cout rows, Kp*Kp*Cin cols, padded)
    # b_ref: (RMp, 1)    bias per (phase, cout) row
    # p_ref: (CKp, TM)   channels-first im2col tile (lane axis = flattened n,j,i)
    # o_ref: (RMp, TM)   lane-dense output tile
    acc = jnp.dot(w_ref[...], p_ref[...], preferred_element_type=jnp.float32)
    o_ref[...] = (acc + b_ref[...]).astype(o_ref.dtype)


def equal_conv_transpose2d(x_nchw, weight, bias, *, stride, padding, tile_m=256):
    """Forward pass of EqualConvTranspose2d.

    x_nchw : (N, Cin, H, W)
    weight : (Cin, Cout, K, K)   -- the `weight_orig` parameter (unscaled)
    bias   : (Cout,)
    """
    N, Cin, H, W = x_nchw.shape
    Cin_w, Cout, K, K2 = weight.shape
    assert Cin == Cin_w and K == K2
    s = int(stride)
    pad = int(padding)

    # --- EqualLR weight scaling (matches EqualLR.compute_weight) ---
    fan_in = Cout * K * K                      # weight.size(1) * weight[0][0].numel()
    w_scaled = (weight * math.sqrt(2.0 / fan_in)).astype(jnp.float32)

    Hout = (H - 1) * s - 2 * pad + K
    Wout = (W - 1) * s - 2 * pad + K
    assert Hout > 0 and Wout > 0
    Hs = _ceil_div(Hout, s)                    # output "super-pixel" rows
    Ws = _ceil_div(Wout, s)

    # --- sub-pixel decomposition bookkeeping (static Python) ---
    # Output pixel oy = j*s + py receives x[iy] * w[.., kh] only for taps with
    # kh ≡ (py + pad) (mod s), at input offset d = (py + pad - kh) / s, iy = j + d.
    offs = sorted({(p + pad - k) // s
                   for p in range(s) for k in range(K)
                   if (p + pad - k) % s == 0})
    dmin, dmax = offs[0], offs[-1]
    Kp = dmax - dmin + 1                       # unified taps per spatial dim

    # Unified weight  (py, px, cout, dy, dx, cin); zero where a tap falls outside [0, K).
    w_uni = jnp.zeros((s, s, Cout, Kp, Kp, Cin), jnp.float32)
    for py in range(s):
        for kh in range(K):
            if (py + pad - kh) % s:
                continue
            dy = (py + pad - kh) // s - dmin
            for px in range(s):
                for kw in range(K):
                    if (px + pad - kw) % s:
                        continue
                    dx = (px + pad - kw) // s - dmin
                    w_uni = w_uni.at[py, px, :, dy, dx, :].set(w_scaled[:, :, kh, kw].T)

    RM = s * s * Cout                          # matmul sublane size (phases x Cout)
    CK = Kp * Kp * Cin                         # contraction size
    RMp = _ceil_div(RM, 8) * 8                 # sublane-align
    CKp = _ceil_div(CK, 8) * 8
    w_mat = jnp.pad(w_uni.reshape(RM, CK), ((0, RMp - RM), (0, CKp - CK)))
    b_mat = jnp.pad(jnp.tile(bias.astype(jnp.float32), s * s).reshape(RM, 1),
                    ((0, RMp - RM), (0, 0)))

    # --- channels-first im2col of the ORIGINAL (undilated) input ---
    #   P[(dy, dx, cin), (n, j, i)] = x_padded[n, cin, j + dy + dmin, i + dx + dmin]
    plo = max(0, -dmin)
    phi_h = max(0, (Hs - 1 + dmax) - (H - 1))
    phi_w = max(0, (Ws - 1 + dmax) - (W - 1))
    xp = jnp.pad(x_nchw.astype(jnp.float32),
                 ((0, 0), (0, 0), (plo, phi_h), (plo, phi_w)))
    slabs = []
    for dy in range(Kp):
        for dx in range(Kp):
            r0 = dy + dmin + plo
            c0 = dx + dmin + plo
            slabs.append(xp[:, :, r0:r0 + Hs, c0:c0 + Ws])     # (N, Cin, Hs, Ws)
    pat = jnp.stack(slabs, axis=0)                              # (Kp*Kp, N, Cin, Hs, Ws)
    pat = jnp.transpose(pat, (0, 2, 1, 3, 4)).reshape(CK, N * Hs * Ws)

    # Tile the flattened (n, j, i) axis -> lane-dense matmul N dim / output lanes.
    M = N * Hs * Ws
    tm = max(128, min(int(tile_m), _ceil_div(M, 128) * 128))   # multiple of 128
    Mp = _ceil_div(M, tm) * tm
    pat = jnp.pad(pat, ((0, CKp - CK), (0, Mp - M)))
    grid_m = Mp // tm

    out_mat = pl.pallas_call(
        _convt_matmul_kernel,
        out_shape=jax.ShapeDtypeStruct((RMp, Mp), jnp.float32),
        grid_spec=pltpu.PrefetchScalarGridSpec(
            num_scalar_prefetch=0,
            grid=(grid_m,),
            in_specs=[
                # weight / bias: constant block index -> resident across grid steps
                pl.BlockSpec((RMp, CKp), lambda m: (0, 0)),
                pl.BlockSpec((RMp, 1), lambda m: (0, 0)),
                # im2col tile: lane axis tiled by the grid
                pl.BlockSpec((CKp, tm), lambda m: (0, m)),
            ],
            out_specs=pl.BlockSpec((RMp, tm), lambda m: (0, m)),
        ),
        compiler_params=pltpu.CompilerParams(
            dimension_semantics=("parallel",),     # tiles may spread over both v7x TCs
            vmem_limit_bytes=32 * 1024 * 1024,     # explicit budget; fits every generation
        ),
    )(w_mat, b_mat, pat)

    # --- pixel-shuffle the (phase, cout) x (n, j, i) result back to NCHW ---
    out = out_mat[:RM, :M].reshape(s, s, Cout, N, Hs, Ws)
    out = jnp.transpose(out, (3, 2, 4, 0, 5, 1))               # (N, Cout, Hs, s, Ws, s)
    out = out.reshape(N, Cout, Hs * s, Ws * s)[:, :, :Hout, :Wout]
    return out.astype(x_nchw.dtype)


if __name__ == "__main__":
    # Module config: EqualConvTranspose2d(4, 8, 4, stride=2, padding=1)
    Cin, Cout, K = 4, 8, 4
    stride, padding = 2, 1
    N, H, W = 2, 16, 16

    key = jax.random.PRNGKey(0)
    kx, kw = jax.random.split(key)
    x = jax.random.normal(kx, (N, Cin, H, W), dtype=jnp.float32)          # NCHW like PyTorch
    weight = jax.random.normal(kw, (Cin, Cout, K, K), dtype=jnp.float32)  # weight_orig ~ N(0,1)
    bias = jnp.zeros((Cout,), dtype=jnp.float32)                          # bias zeroed

    out = equal_conv_transpose2d(x, weight, bias, stride=stride, padding=padding)
    out = jax.block_until_ready(out)

    # sanity check against XLA's dilated conv (same math, non-Pallas path)
    w_scaled = weight * math.sqrt(2.0 / (Cout * K * K))
    w_flip = jnp.transpose(w_scaled, (2, 3, 0, 1))[::-1, ::-1, :, :]
    ref = jax.lax.conv_general_dilated(
        jnp.transpose(x, (0, 2, 3, 1)),
        w_flip,
        window_strides=(1, 1),
        padding=((K - 1 - padding,) * 2, (K - 1 - padding,) * 2),
        lhs_dilation=(stride, stride),
        dimension_numbers=("NHWC", "HWIO", "NHWC"),
        precision=jax.lax.Precision.HIGHEST,
    ) + bias
    ref = jnp.transpose(ref, (0, 3, 1, 2))

    Hout = (H - 1) * stride - 2 * padding + K
    Wout = (W - 1) * stride - 2 * padding + K
    assert out.shape == (N, Cout, Hout, Wout), out.shape
    err = float(jnp.max(jnp.abs(out - ref)))
    assert jnp.allclose(out, ref, atol=1e-3, rtol=1e-3), err

    print("KERNEL_OK")
</pallas_src>

<mosaic_0001>
module attributes {stable_mosaic.version = 11 : i64} {
  func.func @_convt_matmul_kernel(%arg0: i32, %arg1: memref<32x40xf32, #tpu.memory_space<vmem>>, %arg2: memref<32x1xf32, #tpu.memory_space<vmem>>, %arg3: memref<40x256xf32, #tpu.memory_space<vmem>>, %arg4: memref<32x256xf32, #tpu.memory_space<vmem>>) attributes {dimension_semantics = [#tpu.dimension_semantics<parallel>], iteration_bounds = array<i64: 2>, scalar_prefetch = 0 : i64, scratch_operands = 0 : i64, tpu.core_type = #tpu.core_type<tc>, window_params = [{pipeline_mode = #tpu.pipeline_mode<synchronous>, transform_indices = @transform_0, window_bounds = array<i64: 32, 40>}, {pipeline_mode = #tpu.pipeline_mode<synchronous>, transform_indices = @transform_1, window_bounds = array<i64: 32, 1>}, {transform_indices = @transform_2, window_bounds = array<i64: 40, 256>}, {transform_indices = @transform_3, window_bounds = array<i64: 32, 256>}]} {
    %c0 = arith.constant 0 : index
    %c0_0 = arith.constant 0 : index
    %0 = vector.load %arg1[%c0, %c0_0] : memref<32x40xf32, #tpu.memory_space<vmem>>, vector<32x40xf32>
    %c0_1 = arith.constant 0 : index
    %c0_2 = arith.constant 0 : index
    %1 = vector.load %arg3[%c0_1, %c0_2] : memref<40x256xf32, #tpu.memory_space<vmem>>, vector<40x256xf32>
    %cst = arith.constant dense<0.000000e+00> : vector<32x256xf32>
    %2 = tpu.matmul %0, %1, %cst {dimension_numbers = #tpu.dot_dimension_numbers<[1], [0], [0], [1], [0, 0, 1, 1], [], []>} : vector<32x40xf32>, vector<40x256xf32>, vector<32x256xf32> -> vector<32x256xf32>
    %c0_3 = arith.constant 0 : index
    %c0_4 = arith.constant 0 : index
    %3 = vector.load %arg2[%c0_3, %c0_4] : memref<32x1xf32, #tpu.memory_space<vmem>>, vector<32x1xf32>
    %4 = vector.broadcast %3 : vector<32x1xf32> to vector<32x256xf32>
    %5 = arith.addf %2, %4 : vector<32x256xf32>
    %c0_5 = arith.constant 0 : index
    %c0_6 = arith.constant 0 : index
    %6 = vector.load %arg4[%c0_5, %c0_6] : memref<32x256xf32, #tpu.memory_space<vmem>>, vector<32x256xf32>
    tpu.vector_store %arg4[%c0_5, %c0_6], %5 {strides = array<i32>} : memref<32x256xf32, #tpu.memory_space<vmem>>, vector<32x256xf32>,
    return
  }
  func.func @transform_0(%arg0: i32) -> (i32, i32) {
    %c0_i32 = arith.constant 0 : i32
    %c0_i32_0 = arith.constant 0 : i32
    %c0_i32_1 = arith.constant 0 : i32
    return %c0_i32, %c0_i32_0 : i32, i32
  }
  func.func @transform_1(%arg0: i32) -> (i32, i32) {
    %c0_i32 = arith.constant 0 : i32
    %c0_i32_0 = arith.constant 0 : i32
    %c0_i32_1 = arith.constant 0 : i32
    return %c0_i32, %c0_i32_0 : i32, i32
  }
  func.func @transform_2(%arg0: i32) -> (i32, i32) {
    %c0_i32 = arith.constant 0 : i32
    %c0_i32_0 = arith.constant 0 : i32
    return %c0_i32, %arg0 : i32, i32
  }
  func.func @transform_3(%arg0: i32) -> (i32, i32) {
    %c0_i32 = arith.constant 0 : i32
    %c0_i32_0 = arith.constant 0 : i32
    return %c0_i32, %arg0 : i32, i32
  }
}

</mosaic_0001>

<bundles_post_ra>
// kernel: tpu_custom_call.1
= control target key start
LH: loop header
LB: loop body
LE: loop exit
PB: predicated region body
PF: predicated region fallthrough
CT: control target
= control target key end

     0   :  { %8 = vsyncpa [#allocation3], 0  ;;  %s839_s0 = inlined_call_operand.vmem [shape: f32[32,40], index: 0, kind: input, shape index: {}]   ;;  %s840_s1 = inlined_call_operand.vmem [shape: f32[32,1], index: 1, kind: input, shape index: {}]   ;;  %s841_s2 = inlined_call_operand.hbm [shape: f32[40,512], index: 2, kind: input, shape index: {}]   ;;  %s842_s3 = inlined_call_operand.hbm [shape: f32[32,512], index: 3, kind: output, shape index: {}]  }
   0x1   :  { %10 = vsyncpa [#allocation3 + $0x1], 0 }
   0x2   :  { %11 = vsyncpa [#allocation4], 0 }
   0x3   :  { %13 = vsyncpa [#allocation4 + $0x1], 0  ;;  %s644_s12 = smov 0   ;;  %s646_s13 = smov 0  }
   0x4   :  { %s648_s14 = smov 0   ;;  %s650_s15 = smov 0  }
   0x5 LB: > { %s665_s16 = sadd.s32 4294967295, %s612_s15   ;;  %s426_s17 = sadd.s32 4294967294, %s612_s15   ;;  %s612_s15 = sphi %s650_s15, %s855_s15   ;;  %s608_s14 = sphi %s648_s14, %s854_s14   ;;  %s604_s13 = sphi %s646_s13, %s853_s13   ;;  %s600_s12 = sphi %s644_s12, %s852_s12  }
   0x6   : > { %s669_s18 = sadd.s32 1, %s612_s15   ;;  %s68_s19 = sadd.s32 1, %s608_s14 }
   0x7   : > { %s65_s20 = ssub.s32 %s612_s15, %s669_s18  ;;  %p75_p0 = scmp.ne.s32.totalorder %s608_s14, %s604_s13 }
   0x8   : > { %p66_p1 = scmp.eq.s32.totalorder %s65_s20, 0  ;;  %p76_p2 = scmp.eq.s32.totalorder %s612_s15, 0 }
   0x9   : > { %p81_p3 = scmp.ne.s32.totalorder %s604_s13, %s600_s12  ;;  %p82_p4 = scmp.eq.s32.totalorder %s665_s16, 0 }
   0xa   : > { %s681_s21 = scalar_select %p66_p1, %s608_s14, %s68_s19  }
   0xb   : > { %p77_p5 = por %p76_p2, %p75_p0  ;;  %p683_p6 = por %p82_p4, %p81_p3 }
   0xc   : > { %p105_p7 = scmp.eq.s32.totalorder %s665_s16, 1  ;;  %p111_p8 = scmp.eq.s32.totalorder %s426_s17, 1 }
   0xd   : > { %p472_p10 = scmp.lt.s32.totalorder %s612_s15, 2  ;;  %s137_s25 = sand.u32 1, %s608_s14  }
   0xe   : > { %p690_p11 = por %p105_p7, %p75_p0  ;;  %p694_p12 = por %p111_p8, %p81_p3 }
   0xf   : > { %s442_s26 = sshll.u32 %s612_s15, 8  ;;  %s458_s27 = smul.u32 80, %s137_s25 }
  0x10   : > { %s845_s23 = scalar_select %p690_p11, 1, 0 }
  0x11   : > { %s846_s24 = scalar_select %p694_p12, 1, 0 }
  0x12   : > { %s703_s30 = scalar_lea.hbm %s841_s2, %s442_s26  ;;  %p705_p13 = pnand %p472_p10, %p77_p5 }
  0x13   : > { %s141_s5 = scalar_lea.vmem [#allocation2], %s458_s27  ;;  %s712_s7 = scalar_lea.sflag [#allocation3], %s137_s25 }
  0x14   : > { %s148_s6 = sshll.u32 %s141_s5, 4  ;;  %s516_s8 = scalar_lea.hbm %s703_s30, 1280  ;;  %s709_s6 = int_to_ptr.vmem [resolvable:$true] %s148_s6 }
  0x15   : > { %p517_p1 = scmp.ne.s32.totalorder %s703_s30, %s516_s8  ;;  %p518_p2 = pneg %p705_p13 }
  0x16   : > { %s521_s11 = scalar_lea.hbm %s841_s2, 2560  ;;  %p522_p5 = scmp.lt.u32.totalorder %s703_s30, %s841_s2 }
  0x17   : > { %p519_p3 = pnand %p518_p2, %p517_p1  ;;  %p523_p7 = scmp.lt.u32.totalorder %s521_s11, %s516_s8 }
  0x18   : > { %p525_p10 = scmp.lt.u32.totalorder %s516_s8, %s703_s30 }
  0x19   : > { %p520_p4 = pneg %p519_p3  ;;  %p524_p8 = por %p523_p7, %p522_p5 }
  0x1b   : > { %p526_p9 = por %p525_p10, %p524_p8 }
  0x1d   : > { %p527_p0 = pnand %p526_p9, %p520_p4 }
  0x1f   : > { %530 = shalt.err (!%p527_p0)
}
  0x20   : > { %s531_s20 = scalar_lea.vmem %s709_s6, 1280  ;;  %s614_s25 = smov [#allocation2]  }
  0x21   : > { %p532_p1 = scmp.ne.s32.totalorder %s709_s6, %s531_s20  ;;  %s536_s26 = sshll.u32 %s614_s25, 4  ;;  %s537_s26 = int_to_ptr.vmem [resolvable:$false] %s536_s26 }
  0x22   : > { %s538_s27 = scalar_lea.vmem %s537_s26, 2560  ;;  %p539_p11 = scmp.lt.s32.totalorder %s709_s6, %s537_s26 }
  0x23   : > { %p534_p3 = pnand %p532_p1, %p518_p2  ;;  %p540_p5 = scmp.lt.s32.totalorder %s538_s27, %s531_s20 }
  0x25   : > { %p535_p12 = pneg %p534_p3  ;;  %p541_p7 = por %p540_p5, %p539_p11 }
  0x27   : > { %p542_p8 = pnand %p541_p7, %p535_p12 }
  0x29   : > { %545 = shalt.err (!%p542_p8)
}
  0x2a   : > { %s615_s28 = smov 512   ;;  %s616_s29 = smov 256  }
  0x2b   : > { %s617_s5 = smov 16   ;;  %p156_p9 = scmp.lt.s32.totalorder %s612_s15, 3 }
  0x2c   : > { %467 = dma.hbm_to_vmem [thread:$0]  (!%p705_p13), %s703_s30, 1280, %s709_s6, %s712_s7, %s615_s28, %s616_s29, %s617_s5  }
  0x2d   : > { %p848_p0 = scmp.ge.s32.totalorder %s612_s15, 1 }
  0x2f   : > { %p157_p2 = pnand %p848_p0, %p156_p9 }
  0x30   : > { %s744_s8 = sand.u32 (!%p157_p2), 1, %s604_s13  }
  0x31   : > { %160 = sbr.rel (%p157_p2) target bundleno = 305 (0x131), region = 32  ;;  %s163_s10 = scalar_lea.sflag (!%p157_p2), [#allocation3], %s744_s8 }
  0x32   : > { %s459_s9 = smul.u32 (!%p157_p2), 80, %s744_s8 }
  0x34   : > { %s748_s11 = scalar_lea.vmem (!%p157_p2), [#allocation2], %s459_s9 }
  0x38   : > { %591 = dma.done.wait (%p683_p6), %s163_s10, 1280  }
  0x39   : > { %593 = vsyncadd (%p683_p6), %s163_s10, 4294966016  ;;  %v618_v0 = vmov 0.0   ;;  %v619_v1 = vmov 0   ;;  %v196_v2 = vld [vmem:[%s748_s11 + $0x8] sm:$0xff]  ;;  %v198_v3 = vld [vmem:[%s748_s11 + $0x18] sm:$0xff]  ;;  %vm229_vm0 = vcmask 326656  }
  0x3a   : > { %306 = vmatprep.mubr.f32.mxu0 %v618_v0  ;;  %318 = vmatprep.mubr.f32.mxu1 %v618_v0  ;;  %v195_v4 = vld [vmem:[%s748_s11] sm:$0xff]  ;;  %v444_v5 = vpack.c.bf16 %v198_v3, %v196_v2  ;;  %v197_v6 = vld [vmem:[%s748_s11 + $0x10] sm:$0xff]  ;;  %v200_v7 = vld [vmem:[%s748_s11 + $0x28] sm:$0xff]  ;;  %s443_s4 = sshll.u32 %s665_s16, 8  ;;  %s340_s17 = scalar_lea.sflag [#allocation4], %s744_s8 }
  0x3b   : > { %515 = vset.pattern.permute.xlu1 %v619_v1  ;;  %514 = vset.pattern.permute.xlu0 %v619_v1  ;;  %v202_v8 = vld [vmem:[%s748_s11 + $0x38] sm:$0xff]  ;;  %v446_v9 = vpack.c.bf16 %v197_v6, %v195_v4  ;;  %v199_v11 = vld [vmem:[%s748_s11 + $0x20] sm:$0xff]  ;;  %v201_v12 = vld [vmem:[%s748_s11 + $0x30] sm:$0xff]  ;;  %s795_s7 = scalar_lea.hbm %s842_s3, %s443_s4  ;;  %p849_p11 = scmp.ne.s32.totalorder %s845_s23, 0 }
  0x3c   : > { %v448_v10 = vpack.c.bf16 %v202_v8, %v200_v7  ;;  %445 = vmatprep.subr.bf16.mxu0 %v444_v5  ;;  %452 = vmatprep.subr.bf16.mxu1 %v444_v5  ;;  %v450_v13 = vpack.c.bf16 %v201_v12, %v199_v11  ;;  %v207_v14 = vld [vmem:[%s840_s1 + $0x10] sm:$0xff]  ;;  %v205_v15 = vld [vmem:[%s840_s1] sm:$0xff]  ;;  %v204_v16 = vld [vmem:[%s748_s11 + $0x48] sm:$0xff]  ;;  %s620_s20 = smov [#allocation5]  }
  0x3d   : > { %447 = vmatpush1.bf16.msra.mxu0 %v446_v9  ;;  %455 = vmatpush1.bf16.msra.mxu1 %v446_v9  ;;  %v208_v17 = vld [vmem:[%s840_s1 + $0x18] sm:$0xff]  ;;  %v206_v18 = vld [vmem:[%s840_s1 + $0x8] sm:$0xff]  ;;  %v203_v19 = vld [vmem:[%s748_s11 + $0x40] sm:$0xff]  ;;  %s432_s11 = sshll.u32 %s744_s8, 6  ;;  %s550_s25 = sshll.u32 %s620_s20, 4  ;;  %s551_s25 = int_to_ptr.vmem [resolvable:$false] %s550_s25 }
  0x3e   : > { %449 = vmatprep.subr.bf16.mxu0 %v448_v10  ;;  %453 = vmatprep.subr.bf16.mxu1 %v448_v10  ;;  %v191_v20 = vld [vmem:[%s839_s0] sm:$0xff]  ;;  %v193_v21 = vld [vmem:[%s839_s0 + $0x10] sm:$0xff]  ;;  %v192_v22 = vld [vmem:[%s839_s0 + $0x8] sm:$0xff]  ;;  %s188_s22 = scalar_lea.vmem [#allocation5], %s432_s11  ;;  %s552_s26 = scalar_lea.vmem %s551_s25, 2048 }
  0x3f   : > { %221 = vperm.xlu1 %515, %v207_v14   ;;  %211 = vperm.xlu0 %514, %v205_v15   ;;  %v194_v23 = vld [vmem:[%s839_s0 + $0x18] sm:$0xff]  ;;  %s353_s30 = sshll.u32 %s188_s22, 4  ;;  %s790_s30 = int_to_ptr.vmem [resolvable:$true] %s353_s30 }
  0x40   : > { %s546_s19 = scalar_lea.vmem %s790_s30, 1024  ;;  %p553_p4 = scmp.lt.s32.totalorder %s790_s30, %s551_s25 }
  0x41   : > { %451 = vmatpush1.bf16.msra.mxu0 %v450_v13  ;;  %456 = vmatpush1.bf16.msra.mxu1 %v450_v13  ;;  %p547_p6 = scmp.ne.s32.totalorder %s790_s30, %s546_s19  ;;  %p554_p10 = scmp.lt.s32.totalorder %s552_s26, %s546_s19 }
  0x42   : > { %250 = vmatprep.subr.mxu0 %v204_v16  ;;  %454 = vmatprep.subr.mxu1 %v204_v16 }
  0x43   : > { %226 = vperm.xlu1 %515, %v208_v17   ;;  %216 = vperm.xlu0 %514, %v206_v18   ;;  %p548_p12 = pnand %p547_p6, %p849_p11  ;;  %p555_p1 = por %p554_p10, %p553_p4 }
  0x45   : > { %251 = vmatpush1.msra.mxu0 %v203_v19  ;;  %457 = vmatpush1.msra.mxu1 %v203_v19  ;;  %p549_p13 = pneg %p548_p12 }
  0x46   : > { %433 = vmatmul.mubr.msk.f32.vlgmr.msra.gmra.mrb[0].mxu0 %vm229_vm0, %v191_v20  ;;  %435 = vmatmul.mubr.msk.f32.vlgmr.msra.gmra.mrb[0].mxu1 %vm229_vm0, %v193_v21 }
  0x47   : > { %312 = vmatprep.mubr.f32.mxu0 %v618_v0  ;;  %324 = vmatprep.mubr.f32.mxu1 %v618_v0  ;;  %p556_p3 = pnand %p555_p1, %p549_p13 }
  0x4a   : > { %434 = vmatmul.mubr.msk.f32.gmra.mrb[2].mxu0 %vm229_vm0, %v192_v22  ;;  %436 = vmatmul.mubr.msk.f32.gmra.mrb[2].mxu1 %vm229_vm0, %v194_v23 }
  0xbe   : > { %v222_v24 = vpop.permute.xlu1 %221  ;;  %v212_v25 = vpop.permute.xlu0 %211 }
  0xc2   : > { %v227_v34 = vpop.permute.xlu1 %226  ;;  %v217_v35 = vpop.permute.xlu0 %216 }
 0x119   : > { %v308_v26 = vpop.f32.mrb[0].mxu0  ;;  %v320_v27 = vpop.f32.mrb[0].mxu1 }
 0x11a   : > { %v309_v28 = vadd.f32 %v308_v26, %v212_v25  ;;  %v321_v29 = vadd.f32 %v320_v27, %v222_v24  ;;  %v310_v30 = vpop.f32.mrb[1].mxu0  ;;  %v322_v31 = vpop.f32.mrb[1].mxu1 }
 0x11b   : > { %v311_v32 = vadd.f32 %v310_v30, %v212_v25  ;;  %v323_v33 = vadd.f32 %v322_v31, %v222_v24 }
 0x11c   : > { %331 = vst [vmem:[%s188_s22] sm:$0xff] %v309_v28  ;;  %335 = vst [vmem:[%s188_s22 + $0x20] sm:$0xff] %v321_v29 }
 0x11d   : > { %332 = vst [vmem:[%s188_s22 + $0x8] sm:$0xff] %v311_v32  ;;  %336 = vst [vmem:[%s188_s22 + $0x28] sm:$0xff] %v323_v33  ;;  %v314_v36 = vpop.f32.mrb[2].mxu0  ;;  %v326_v37 = vpop.f32.mrb[2].mxu1 }
 0x11e   : > { %v315_v38 = vadd.f32 %v314_v36, %v217_v35  ;;  %v327_v39 = vadd.f32 %v326_v37, %v227_v34  ;;  %v316_v40 = vpop.f32.mrb[3].mxu0  ;;  %v328_v41 = vpop.f32.mrb[3].mxu1 }
 0x11f   : > { %v317_v42 = vadd.f32 %v316_v40, %v217_v35  ;;  %v329_v43 = vadd.f32 %v328_v41, %v227_v34 }
 0x120   : > { %333 = vst [vmem:[%s188_s22 + $0x10] sm:$0xff] %v315_v38  ;;  %337 = vst [vmem:[%s188_s22 + $0x30] sm:$0xff] %v327_v39 }
 0x121   : > { %334 = vst [vmem:[%s188_s22 + $0x18] sm:$0xff] %v317_v42  ;;  %338 = vst [vmem:[%s188_s22 + $0x38] sm:$0xff] %v329_v43 }
 0x122   : > { %559 = shalt.err (!%p556_p3)
}
 0x123   : > { %s560_s27 = scalar_lea.hbm %s795_s7, 1024  ;;  %s564_s5 = scalar_lea.hbm %s842_s3, 2048 }
 0x124   : > { %p561_p5 = scmp.ne.s32.totalorder %s795_s7, %s560_s27  ;;  %p565_p9 = scmp.lt.u32.totalorder %s795_s7, %s842_s3 }
 0x125   : > { %p566_p0 = scmp.lt.u32.totalorder %s564_s5, %s560_s27  ;;  %p568_p6 = scmp.lt.u32.totalorder %s560_s27, %s795_s7 }
 0x126   : > { %p562_p7 = pnand %p561_p5, %p849_p11 }
 0x127   : > { %p567_p2 = por %p566_p0, %p565_p9 }
 0x128   : > { %p563_p8 = pneg %p562_p7 }
 0x129   : > { %p569_p12 = por %p568_p6, %p567_p2 }
 0x12b   : > { %p570_p13 = pnand %p569_p12, %p563_p8 }
 0x12d   : > { %573 = shalt.err (!%p570_p13)
}
 0x12e   : > { %s621_s11 = smov 256   ;;  %s622_s22 = smov 512  }
 0x12f   : > { %s623_s4 = smov 16  }
 0x130   : > { %462 = dma.vmem_to_hbm [thread:$0]  (%p849_p11), %s790_s30, 1024, %s795_s7, %s340_s17, %s621_s11, %s622_s22, %s623_s4  }
 0x131 PF: > { %s368_s6 = sand.u32 1, %s600_s12   ;;  %p850_p4 = scmp.ne.s32.totalorder %s846_s24, 0 }
 0x132   : > { %p851_p10 = scmp.ge.s32.totalorder %s612_s15, 2  ;;  %s369_s16 = scalar_lea.sflag [#allocation4], %s368_s6 }
 0x134   : > { %p469_p1 = pnand %p851_p10, %p850_p4 }
 0x136   : > { %595 = dma.done.wait (!%p469_p1), %s369_s16, 1024  }
 0x137   : > { %597 = vsyncadd (!%p469_p1), %s369_s16, 4294966272  ;;  %p16_p3 = scmp.ge.s32.totalorder %s669_s18, 4   ;;  %s852_s12 = smov %s604_s13 }
 0x138   : > { %s853_s13 = smov %s608_s14  ;;  %s854_s14 = smov %s681_s21 }
 0x139   : > { %s855_s15 = smov %s669_s18  ;;  %18 = sbr.rel (!%p16_p3) target bundleno = 5 (0x5), region = 77 }
 0x140   :  { %374 = vsyncpa [#allocation3], 1 }
 0x141   :  { %376 = vsyncpa [#allocation3 + $0x1], 1 }
 0x142   :  { %377 = vsyncpa [#allocation4], 1 }
 0x143   :  { %379 = vsyncpa [#allocation4 + $0x1], 1 }

</bundles_post_ra>
